<compile_context>
chip_gen: v6e
topology: v6e:2x2x1
jax: 0.10.0
libtpu: 0.0.40
codegen_flags: <defaults>
</compile_context>

<pallas_src>
import functools
import math

import jax
import jax.numpy as jnp
from jax.experimental import pallas as pl
from jax.experimental.pallas import tpu as pltpu

NB_JOINTS = 24                                # as in the reference script
DEFAULT_BLOCK_BYTES = 5 * 1024 * 1024 // 2    # ~2.5 MiB per input block
DEFAULT_CORE_SPLITS = 2                       # v7x: 2 TCs; harmless on 1-TC chips


def _elementwise_loss(diff, loss_type):
    if loss_type == "l1":
        return jnp.abs(diff)
    if loss_type == "l2":
        return diff * diff
    if loss_type == "l1_smooth":              # torch SmoothL1Loss, beta = 1.0
        ad = jnp.abs(diff)
        return jnp.where(ad < 1.0, 0.5 * diff * diff, ad - 0.5)
    raise ValueError(f"unknown loss type: {loss_type}")


def _recons_loss_kernel(pred_ref, gt_ref, out_ref, *, loss_type, d, motion_dim,
                        nblocks, steps_per_core, has_dup):
    c = pl.program_id(0)      # core split  ("parallel")
    i = pl.program_id(1)      # row-tile walk ("arbitrary")

    @pl.when(i == 0)
    def _():
        out_ref[...] = jnp.zeros_like(out_ref)

    def accumulate():
        pred = pred_ref[...].astype(jnp.float32)
        gt = gt_ref[...].astype(jnp.float32)
        per = _elementwise_loss(pred - gt, loss_type)

        rows, w = per.shape
        if motion_dim < d:
            # Keep feature (col % d) < motion_dim, expressed as a static OR of
            # the w // d per-replica intervals (no vector integer division).
            col = jax.lax.broadcasted_iota(jnp.int32, (1, w), 1)
            keep = col < motion_dim
            for k in range(1, w // d):
                keep = keep | ((col >= k * d) & (col < k * d + motion_dim))
            per = jnp.where(keep, per, jnp.float32(0.0))

        # Fold the (rows, w) tile onto the resident one-slab (8, w) accumulator.
        out_ref[...] += jnp.sum(per.reshape(rows // 8, 8, w), axis=0)

    if has_dup:
        # Uneven core split: virtual steps past the real tile count read a
        # clamped duplicate tile -> skip them entirely.
        pl.when(c * steps_per_core + i < nblocks)(accumulate)
    else:
        accumulate()


def recons_loss(motion_pred, motion_gt, *, recons_loss_type="l1",
                nb_joints=NB_JOINTS, block_bytes=DEFAULT_BLOCK_BYTES,
                num_core_splits=DEFAULT_CORE_SPLITS):
    """Pallas implementation of ReConsLoss.forward. Returns a scalar f32."""
    assert motion_pred.shape == motion_gt.shape
    motion_dim = nb_joints * 3
    d = motion_pred.shape[-1]
    assert d >= motion_dim, "feature dim must be >= nb_joints * 3"

    pred2d = motion_pred.reshape(-1, d)
    gt2d = motion_gt.reshape(-1, d)
    n_rows = pred2d.shape[0]
    inv_count = 1.0 / float(n_rows * motion_dim)

    itemsize = int(jnp.dtype(motion_pred.dtype).itemsize)
    sub_mult = max(8, 32 // max(itemsize, 1))   # f32: 8, bf16: 16, int8/fp8: 32

    # Lane-dense repack: (rows, d) -> (rows/g, g*d) with g*d a multiple of 128.
    g = 128 // math.gcd(d, 128)
    if g > 1 and n_rows % g == 0:
        x = pred2d.reshape(n_rows // g, g * d)
        y = gt2d.reshape(n_rows // g, g * d)
    else:
        g = 1
        x, y = pred2d, gt2d
    w = g * d
    rows_g = x.shape[0]

    # Row-tile size targeting ~block_bytes per input block.
    tile_target = max(
        sub_mult, (int(block_bytes) // (w * itemsize)) // sub_mult * sub_mult)

    if rows_g <= tile_target:
        # Small input: single tile; padding the few missing rows is cheap and
        # the zero rows contribute exactly 0 to the sum.
        tile_r = pl.cdiv(rows_g, sub_mult) * sub_mult
        if tile_r != rows_g:
            x = jnp.pad(x, ((0, tile_r - rows_g), (0, 0)))
            y = jnp.pad(y, ((0, tile_r - rows_g), (0, 0)))
        nblocks = 1
        tail_start = n_rows                      # no tail
    else:
        # Large input: whole tiles only (no full-array pad copy); the ragged
        # tail (< one tile) is handled outside the kernel.
        tile_r = tile_target
        nblocks = rows_g // tile_r
        tail_start = nblocks * tile_r * g        # in original (un-packed) rows

    num_cores = max(1, min(int(num_core_splits), nblocks))
    steps_per_core = pl.cdiv(nblocks, num_cores)
    has_dup = (num_cores * steps_per_core) != nblocks

    kernel = functools.partial(
        _recons_loss_kernel,
        loss_type=recons_loss_type, d=d, motion_dim=motion_dim,
        nblocks=nblocks, steps_per_core=steps_per_core, has_dup=has_dup)

    def in_map(c, i):
        # Clamp duplicate virtual steps of an uneven split to a valid tile
        # (their contribution is skipped in-kernel).
        return (jnp.minimum(c * steps_per_core + i, nblocks - 1), 0)

    partial_sums = pl.pallas_call(
        kernel,
        out_shape=jax.ShapeDtypeStruct((num_cores * 8, w), jnp.float32),
        grid_spec=pltpu.PrefetchScalarGridSpec(
            num_scalar_prefetch=0,
            grid=(num_cores, steps_per_core),
            in_specs=[pl.BlockSpec((tile_r, w), in_map),
                      pl.BlockSpec((tile_r, w), in_map)],
            out_specs=pl.BlockSpec((8, w), lambda c, i: (c, 0)),
        ),
        compiler_params=pltpu.CompilerParams(
            dimension_semantics=("parallel", "arbitrary")),
    )(x, y)

    total = jnp.sum(partial_sums)

    if tail_start < n_rows:   # tiny ragged tail (< one tile) done in plain jnp
        tp = pred2d[tail_start:, :motion_dim].astype(jnp.float32)
        tg = gt2d[tail_start:, :motion_dim].astype(jnp.float32)
        total = total + jnp.sum(_elementwise_loss(tp - tg, recons_loss_type))

    return total * jnp.float32(inv_count)


def _reference_loss(pred, gt, loss_type, nb_joints=NB_JOINTS):
    md = nb_joints * 3
    p = pred[..., :md].astype(jnp.float32)
    g = gt[..., :md].astype(jnp.float32)
    return jnp.mean(_elementwise_loss(p - g, loss_type))


if __name__ == "__main__":
    key = jax.random.PRNGKey(0)

    ok = True
    # (shape, block_bytes) — chosen to exercise every code path:
    #   1) lane-dense repack, single small tile with row padding
    #   2) non-divisible rows -> un-packed fallback, single tile + padding
    #   3) multi-tile grid, 2-way core split (even), jnp tail
    #   4) multi-tile grid, 2-way core split with a duplicate (clamped) step
    configs = [
        ((2, 8, 80), DEFAULT_BLOCK_BYTES),
        ((3, 37, 80), DEFAULT_BLOCK_BYTES),
        ((4, 100, 80), 40_000),
        ((4, 100, 80), 60_000),
    ]
    for shape, bb in configs:
        key, k1, k2 = jax.random.split(key, 3)
        motion_pred = jax.random.normal(k1, shape, dtype=jnp.float32)
        motion_gt = jax.random.normal(k2, shape, dtype=jnp.float32)
        for lt in ("l1", "l2", "l1_smooth"):
            loss = recons_loss(motion_pred, motion_gt,
                               recons_loss_type=lt, block_bytes=bb)
            loss = jax.block_until_ready(loss)
            ref = jax.block_until_ready(
                _reference_loss(motion_pred, motion_gt, lt))
            if not jnp.allclose(loss, ref, rtol=1e-4, atol=1e-5):
                ok = False
                print(f"MISMATCH ({shape}, bb={bb}, {lt}): "
                      f"kernel={loss} ref={ref}")

    if ok:
        print("KERNEL_OK")
</pallas_src>

<mosaic_0001>
module attributes {stable_mosaic.version = 11 : i64} {
  func.func @_recons_loss_kernel(%arg0: i32, %arg1: i32, %arg2: memref<8x640xf32, #tpu.memory_space<vmem>>, %arg3: memref<8x640xf32, #tpu.memory_space<vmem>>, %arg4: memref<8x640xf32, #tpu.memory_space<vmem>>) attributes {dimension_semantics = [#tpu.dimension_semantics<parallel>, #tpu.dimension_semantics<arbitrary>], iteration_bounds = array<i64: 1, 1>, scalar_prefetch = 0 : i64, scratch_operands = 0 : i64, tpu.core_type = #tpu.core_type<tc>, window_params = [{transform_indices = @transform_0, window_bounds = array<i64: 8, 640>}, {transform_indices = @transform_1, window_bounds = array<i64: 8, 640>}, {transform_indices = @transform_2, window_bounds = array<i64: 8, 640>}]} {
    %c0_i32 = arith.constant 0 : i32
    %0 = arith.cmpi eq, %arg1, %c0_i32 : i32
    %1 = arith.extui %0 : i1 to i32
    %c0_i32_0 = arith.constant 0 : i32
    %2 = arith.cmpi ne, %1, %c0_i32_0 : i32
    scf.if %2 {
      %cst_9 = arith.constant 0.000000e+00 : f32
      %61 = vector.broadcast %cst_9 : f32 to vector<8x640xf32>
      %c0_10 = arith.constant 0 : index
      %c0_11 = arith.constant 0 : index
      %62 = vector.load %arg4[%c0_10, %c0_11] : memref<8x640xf32, #tpu.memory_space<vmem>>, vector<8x640xf32>
      tpu.vector_store %arg4[%c0_10, %c0_11], %61 {strides = array<i32>} : memref<8x640xf32, #tpu.memory_space<vmem>>, vector<8x640xf32>,
    } else {
    }
    %c0 = arith.constant 0 : index
    %c0_1 = arith.constant 0 : index
    %3 = vector.load %arg2[%c0, %c0_1] : memref<8x640xf32, #tpu.memory_space<vmem>>, vector<8x640xf32>
    %c0_2 = arith.constant 0 : index
    %c0_3 = arith.constant 0 : index
    %4 = vector.load %arg3[%c0_2, %c0_3] : memref<8x640xf32, #tpu.memory_space<vmem>>, vector<8x640xf32>
    %5 = arith.subf %3, %4 : vector<8x640xf32>
    %6 = math.absf %5 : vector<8x640xf32>
    %7 = tpu.iota {dimensions = array<i32: 1>} : vector<1x640xi32>
    %c72_i32 = arith.constant 72 : i32
    %8 = vector.broadcast %c72_i32 : i32 to vector<1x640xi32>
    %9 = arith.cmpi slt, %7, %8 : vector<1x640xi32>
    %c80_i32 = arith.constant 80 : i32
    %10 = vector.broadcast %c80_i32 : i32 to vector<1x640xi32>
    %11 = arith.cmpi sge, %7, %10 : vector<1x640xi32>
    %c152_i32 = arith.constant 152 : i32
    %12 = vector.broadcast %c152_i32 : i32 to vector<1x640xi32>
    %13 = arith.cmpi slt, %7, %12 : vector<1x640xi32>
    %14 = arith.andi %11, %13 : vector<1x640xi1>
    %15 = arith.ori %9, %14 : vector<1x640xi1>
    %c160_i32 = arith.constant 160 : i32
    %16 = vector.broadcast %c160_i32 : i32 to vector<1x640xi32>
    %17 = arith.cmpi sge, %7, %16 : vector<1x640xi32>
    %c232_i32 = arith.constant 232 : i32
    %18 = vector.broadcast %c232_i32 : i32 to vector<1x640xi32>
    %19 = arith.cmpi slt, %7, %18 : vector<1x640xi32>
    %20 = arith.andi %17, %19 : vector<1x640xi1>
    %21 = arith.ori %15, %20 : vector<1x640xi1>
    %c240_i32 = arith.constant 240 : i32
    %22 = vector.broadcast %c240_i32 : i32 to vector<1x640xi32>
    %23 = arith.cmpi sge, %7, %22 : vector<1x640xi32>
    %c312_i32 = arith.constant 312 : i32
    %24 = vector.broadcast %c312_i32 : i32 to vector<1x640xi32>
    %25 = arith.cmpi slt, %7, %24 : vector<1x640xi32>
    %26 = arith.andi %23, %25 : vector<1x640xi1>
    %27 = arith.ori %21, %26 : vector<1x640xi1>
    %c320_i32 = arith.constant 320 : i32
    %28 = vector.broadcast %c320_i32 : i32 to vector<1x640xi32>
    %29 = arith.cmpi sge, %7, %28 : vector<1x640xi32>
    %c392_i32 = arith.constant 392 : i32
    %30 = vector.broadcast %c392_i32 : i32 to vector<1x640xi32>
    %31 = arith.cmpi slt, %7, %30 : vector<1x640xi32>
    %32 = arith.andi %29, %31 : vector<1x640xi1>
    %33 = arith.ori %27, %32 : vector<1x640xi1>
    %c400_i32 = arith.constant 400 : i32
    %34 = vector.broadcast %c400_i32 : i32 to vector<1x640xi32>
    %35 = arith.cmpi sge, %7, %34 : vector<1x640xi32>
    %c472_i32 = arith.constant 472 : i32
    %36 = vector.broadcast %c472_i32 : i32 to vector<1x640xi32>
    %37 = arith.cmpi slt, %7, %36 : vector<1x640xi32>
    %38 = arith.andi %35, %37 : vector<1x640xi1>
    %39 = arith.ori %33, %38 : vector<1x640xi1>
    %c480_i32 = arith.constant 480 : i32
    %40 = vector.broadcast %c480_i32 : i32 to vector<1x640xi32>
    %41 = arith.cmpi sge, %7, %40 : vector<1x640xi32>
    %c552_i32 = arith.constant 552 : i32
    %42 = vector.broadcast %c552_i32 : i32 to vector<1x640xi32>
    %43 = arith.cmpi slt, %7, %42 : vector<1x640xi32>
    %44 = arith.andi %41, %43 : vector<1x640xi1>
    %45 = arith.ori %39, %44 : vector<1x640xi1>
    %c560_i32 = arith.constant 560 : i32
    %46 = vector.broadcast %c560_i32 : i32 to vector<1x640xi32>
    %47 = arith.cmpi sge, %7, %46 : vector<1x640xi32>
    %c632_i32 = arith.constant 632 : i32
    %48 = vector.broadcast %c632_i32 : i32 to vector<1x640xi32>
    %49 = arith.cmpi slt, %7, %48 : vector<1x640xi32>
    %50 = arith.andi %47, %49 : vector<1x640xi1>
    %51 = arith.ori %45, %50 : vector<1x640xi1>
    %cst = arith.constant 0.000000e+00 : f32
    %52 = vector.shape_cast %51 : vector<1x640xi1> to vector<1x640xi1>
    %53 = vector.broadcast %52 : vector<1x640xi1> to vector<8x640xi1>
    %54 = vector.broadcast %cst : f32 to vector<8x640xf32>
    %55 = arith.select %53, %6, %54 : vector<8x640xi1>, vector<8x640xf32>
    %c0_4 = arith.constant 0 : index
    %c0_5 = arith.constant 0 : index
    %56 = vector.load %arg4[%c0_4, %c0_5] : memref<8x640xf32, #tpu.memory_space<vmem>>, vector<8x640xf32>
    %57 = vector.shape_cast %55 : vector<8x640xf32> to vector<1x8x640xf32>
    %cst_6 = arith.constant dense<0.000000e+00> : vector<8x640xf32>
    %58 = vector.multi_reduction <add>, %57, %cst_6 [0] : vector<1x8x640xf32> to vector<8x640xf32>
    %59 = arith.addf %56, %58 : vector<8x640xf32>
    %c0_7 = arith.constant 0 : index
    %c0_8 = arith.constant 0 : index
    %60 = vector.load %arg4[%c0_7, %c0_8] : memref<8x640xf32, #tpu.memory_space<vmem>>, vector<8x640xf32>
    tpu.vector_store %arg4[%c0_7, %c0_8], %59 {strides = array<i32>} : memref<8x640xf32, #tpu.memory_space<vmem>>, vector<8x640xf32>,
    return
  }
  func.func @transform_0(%arg0: i32, %arg1: i32) -> (i32, i32) {
    %c1_i32 = arith.constant 1 : i32
    %0 = arith.muli %arg0, %c1_i32 : i32
    %1 = arith.addi %0, %arg1 : i32
    %c0_i32 = arith.constant 0 : i32
    %2 = arith.minsi %1, %c0_i32 : i32
    %c0_i32_0 = arith.constant 0 : i32
    %c0_i32_1 = arith.constant 0 : i32
    return %2, %c0_i32_0 : i32, i32
  }
  func.func @transform_1(%arg0: i32, %arg1: i32) -> (i32, i32) {
    %c1_i32 = arith.constant 1 : i32
    %0 = arith.muli %arg0, %c1_i32 : i32
    %1 = arith.addi %0, %arg1 : i32
    %c0_i32 = arith.constant 0 : i32
    %2 = arith.minsi %1, %c0_i32 : i32
    %c0_i32_0 = arith.constant 0 : i32
    %c0_i32_1 = arith.constant 0 : i32
    return %2, %c0_i32_0 : i32, i32
  }
  func.func @transform_2(%arg0: i32, %arg1: i32) -> (i32, i32) {
    %c0_i32 = arith.constant 0 : i32
    %c0_i32_0 = arith.constant 0 : i32
    return %arg0, %c0_i32 : i32, i32
  }
}

</mosaic_0001>

<bundles_post_ra>
// kernel: tpu_custom_call.1
= control target key start
LH: loop header
LB: loop body
LE: loop exit
PB: predicated region body
PF: predicated region fallthrough
CT: control target
= control target key end

     0   :  { %7 = vsyncpa [#allocation3], 0  ;;  %s411_s0 = inlined_call_operand.hbm [shape: f32[8,640], index: 0, kind: input, shape index: {}]   ;;  %s412_s1 = inlined_call_operand.hbm [shape: f32[8,640], index: 1, kind: input, shape index: {}]   ;;  %s413_s2 = inlined_call_operand.hbm [shape: f32[8,640], index: 2, kind: output, shape index: {}]  }
   0x1   :  { %8 = vsyncpa [#allocation6], 0 }
   0x2   :  { %9 = vsyncpa [#allocation4], 0  ;;  %s359_s9 = smov [#allocation2]   ;;  %s360_s11 = smov [#allocation5]  }
   0x3   :  { %s22_s10 = sshll.u32 %s359_s9, 4  ;;  %s38_s12 = sshll.u32 %s360_s11, 4  ;;  %s23_s10 = int_to_ptr.vmem [resolvable:$true] %s22_s10  ;;  %s39_s12 = int_to_ptr.vmem [resolvable:$true] %s38_s12 }
   0x4   :  { %s301_s13 = scalar_lea.vmem %s23_s10, 640  ;;  %p306_p1 = scmp.lt.s32.totalorder %s23_s10, %s23_s10 }
   0x5   :  { %p302_p0 = scmp.ne.s32.totalorder %s23_s10, %s301_s13  ;;  %p307_p2 = scmp.lt.s32.totalorder %s301_s13, %s301_s13 }
   0x7   :  { %p308_p3 = por %p307_p2, %p306_p1 }
   0x9   :  { %p309_p4 = pnand %p308_p3, %p302_p0 }
   0xb   :  { %312 = shalt.err (!%p309_p4)
}
   0xc   :  { %25 = dma.hbm_to_vmem [thread:$0]  %s411_s0, 640, %s23_s10, [#allocation3]  }
   0xd   :  { %s321_s16 = scalar_lea.vmem %s39_s12, 640  ;;  %p326_p6 = scmp.lt.s32.totalorder %s39_s12, %s39_s12 }
   0xe   :  { %p322_p5 = scmp.ne.s32.totalorder %s39_s12, %s321_s16  ;;  %p327_p7 = scmp.lt.s32.totalorder %s321_s16, %s321_s16 }
  0x10   :  { %p328_p8 = por %p327_p7, %p326_p6 }
  0x12   :  { %p329_p9 = pnand %p328_p8, %p322_p5 }
  0x14   :  { %332 = shalt.err (!%p329_p9)
}
  0x15   :  { %41 = dma.hbm_to_vmem [thread:$0]  %s412_s1, 640, %s39_s12, [#allocation6]  }
  0x16   :  { %353 = dma.done.wait [#allocation3], 640  }
  0x17   :  { %354 = vsyncadd [#allocation3], 4294966656 }
  0x18   :  { %355 = dma.done.wait [#allocation6], 640  }
  0x19   :  { %356 = vsyncadd [#allocation6], 4294966656  ;;  %v83_v0 = vlaneseq  ;;  %v63_v6 = vld [vmem:[#allocation2] sm:$0xff]  ;;  %v68_v7 = vld [vmem:[#allocation5] sm:$0xff]  ;;  %s361_s0 = smov [#allocation7]  }
  0x1a   :  { %v64_v8 = vld [vmem:[#allocation2 + $0x8] sm:$0xff]  ;;  %v73_v10 = vsub.f32 %v63_v6, %v68_v7  ;;  %v69_v11 = vld [vmem:[#allocation5 + $0x8] sm:$0xff]  ;;  %v70_v14 = vld [vmem:[#allocation5 + $0x10] sm:$0xff]  ;;  %s275_s1 = sshll.u32 %s361_s0, 4  ;;  %s276_s1 = int_to_ptr.vmem [resolvable:$true] %s275_s1 }
  0x1b   :  { %v84_v1 = vand.u32 127, %v83_v0  ;;  %v65_v12 = vld [vmem:[#allocation2 + $0x10] sm:$0xff]  ;;  %v74_v13 = vsub.f32 %v64_v8, %v69_v11  ;;  %v66_v15 = vld [vmem:[#allocation2 + $0x18] sm:$0xff]  ;;  %v71_v19 = vld [vmem:[#allocation5 + $0x18] sm:$0xff]  ;;  %s333_s19 = scalar_lea.vmem %s276_s1, 640  ;;  %p338_p11 = scmp.lt.s32.totalorder %s276_s1, %s276_s1 }
  0x1c   :  { %v78_v16 = vand.u32 2147483647, %v73_v10  ;;  %v75_v18 = vsub.f32 %v65_v12, %v70_v14  ;;  %v67_v20 = vld [vmem:[#allocation2 + $0x20] sm:$0xff]  ;;  %v76_v23 = vsub.f32 %v66_v15, %v71_v19  ;;  %v72_v24 = vld [vmem:[#allocation5 + $0x20] sm:$0xff]  ;;  %p334_p10 = scmp.ne.s32.totalorder %s276_s1, %s333_s19  ;;  %p339_p12 = scmp.lt.s32.totalorder %s333_s19, %s333_s19 }
  0x1d   :  { %vm89_vm0 = vcmp.lt.s32.totalorder %v84_v1, 72  ;;  %vm94_vm1 = vcmp.ge.s32.totalorder %v84_v1, 80  ;;  %v85_v2 = vadd.s32 128, %v84_v1  ;;  %v86_v3 = vadd.s32 256, %v84_v1 }
  0x1e   :  { %v87_v4 = vadd.s32 384, %v84_v1  ;;  %vm383_vm2 = vmor %vm89_vm0, %vm94_vm1  ;;  %v88_v9 = vadd.s32 512, %v84_v1  ;;  %v79_v21 = vand.u32 2147483647, %v74_v13  ;;  %v80_v26 = vand.u32 2147483647, %v75_v18  ;;  %p340_p13 = por %p339_p12, %p338_p11 }
  0x1f   :  { %vm100_vm3 = vcmp.lt.s32.totalorder %v85_v2, 152  ;;  %vm115_vm4 = vcmp.ge.s32.totalorder %v85_v2, 160  ;;  %vm120_vm5 = vcmp.lt.s32.totalorder %v85_v2, 232  ;;  %vm135_vm6 = vcmp.ge.s32.totalorder %v85_v2, 240 }
  0x20   :  { %vm125_vm7 = vmand %vm115_vm4, %vm120_vm5  ;;  %vm141_vm8 = vcmp.lt.s32.totalorder %v86_v3, 312  ;;  %vm156_vm9 = vcmp.ge.s32.totalorder %v86_v3, 320  ;;  %vm177_vm11 = vcmp.ge.s32.totalorder %v87_v4, 400  ;;  %vm182_vm12 = vcmp.lt.s32.totalorder %v87_v4, 472  ;;  %p341_p0 = pnand %p340_p13, %p334_p10 }
  0x21   :  { %vm130_vm10 = vmor %vm100_vm3, %vm125_vm7  ;;  %vm162_vm14 = vcmp.lt.s32.totalorder %v87_v4, 392  ;;  %vm197_vm0 = vcmp.ge.s32.totalorder %v87_v4, 480  ;;  %vm218_vm1 = vcmp.ge.s32.totalorder %v88_v9, 560  ;;  %v244_v25 = vsel %vm383_vm2, %v78_v16, 0.0 }
  0x22   :  { %vm389_vm13 = vmor %vm130_vm10, %vm135_vm6  ;;  %v77_v27 = vsub.f32 %v67_v20, %v72_v24  ;;  %vm223_vm4 = vcmp.lt.s32.totalorder %v88_v9, 632  ;;  %v81_v29 = vand.u32 2147483647, %v76_v23  ;;  %vm203_vm6 = vcmp.lt.s32.totalorder %v88_v9, 552  ;;  %264 = vst [vmem:[#allocation7] sm:$0xff] %v244_v25 }
  0x23   :  { %vm394_vm15 = vmor %vm141_vm8, %vm156_vm9  ;;  %v245_v28 = vsel %vm389_vm13, %v79_v21, 0.0 }
  0x24   :  { %vm187_vm3 = vmand %vm177_vm11, %vm182_vm12  ;;  %v246_v30 = vsel %vm394_vm15, %v80_v26, 0.0  ;;  %v82_v31 = vand.u32 2147483647, %v77_v27  ;;  %265 = vst [vmem:[#allocation7 + $0x8] sm:$0xff] %v245_v28 }
  0x25   :  { %vm192_vm5 = vmor %vm162_vm14, %vm187_vm3  ;;  %266 = vst [vmem:[#allocation7 + $0x10] sm:$0xff] %v246_v30 }
  0x26   :  { %vm212_vm7 = vmor %vm192_vm5, %vm197_vm0 }
  0x27   :  { %v247_v32 = vsel %vm212_vm7, %v81_v29, 0.0  ;;  %vm228_vm2 = vmand %vm218_vm1, %vm223_vm4 }
  0x28   :  { %vm233_vm8 = vmor %vm203_vm6, %vm228_vm2  ;;  %267 = vst [vmem:[#allocation7 + $0x18] sm:$0xff] %v247_v32 }
  0x29   :  { %v248_v33 = vsel %vm233_vm8, %v82_v31, 0.0 }
  0x2a   :  { %268 = vst [vmem:[#allocation7 + $0x20] sm:$0xff] %v248_v33 }
  0x2b   :  { %344 = shalt.err (!%p341_p0)
}
  0x2c   :  { %278 = dma.vmem_to_hbm [thread:$0]  %s276_s1, 640, %s413_s2, [#allocation4]  }
  0x2d   :  { %357 = dma.done.wait [#allocation4], 640  }
  0x2e   :  { %358 = vsyncadd [#allocation4], 4294966656 }
  0x2f   :  { %282 = vsyncpa [#allocation3], 1 }
  0x30   :  { %283 = vsyncpa [#allocation6], 1 }
  0x31   :  { %284 = vsyncpa [#allocation4], 1 }

</bundles_post_ra>
